<compile_context>
chip_gen: v7x
topology: tpu7x:2x2x1
jax: 0.10.0
libtpu: 0.0.40
codegen_flags: <defaults>
</compile_context>

<pallas_src>
import jax
import jax.numpy as jnp
from jax.experimental import pallas as pl
from jax.experimental.pallas import tpu as pltpu


def critic_kernel(s_ref, a_ref, w1s_ref, w1a_ref, b1_ref,
                  w2_ref, b2_ref, w3_ref, b3_ref, o_ref):
    # One batch tile per grid step; all weights resident in VMEM.
    dd = w1s_ref.dtype  # MXU operand dtype (bf16 or f32); accumulation is f32.

    s = s_ref[...]
    a = a_ref[...]

    # fc1 on the (virtually) concatenated [state, action]:
    #   cat([s, a]) @ W1 == s @ W1[:in_dims] + a @ W1[in_dims:]
    h1 = (jnp.dot(s.astype(dd), w1s_ref[...], preferred_element_type=jnp.float32)
          + jnp.dot(a.astype(dd), w1a_ref[...], preferred_element_type=jnp.float32)
          + b1_ref[...])
    h1 = jnp.maximum(h1, 0.0)

    # fc2 + relu
    h2 = jnp.dot(h1.astype(dd), w2_ref[...], preferred_element_type=jnp.float32) + b2_ref[...]
    h2 = jnp.maximum(h2, 0.0)

    # q1 head: N=1 matmul replaced by a VPU multiply + lane reduction (f32).
    q = jnp.sum(h2 * w3_ref[...], axis=-1, keepdims=True) + b3_ref[...]
    o_ref[...] = q.astype(o_ref.dtype)


def _round_up(x, m):
    return ((x + m - 1) // m) * m


def critic_forward(state, action, params, *, tile_b=256, compute_dtype=jnp.bfloat16):
    """state: (B, input_dims), action: (B, n_actions) -> (B, 1) float32."""
    w1_s, w1_a, b1, w2, b2, w3, b3 = params
    B, in_dims = state.shape
    n_act = action.shape[1]
    fc1 = w1_s.shape[1]
    fc2 = w2.shape[1]

    # Batch tile must be a multiple of 8 (sublane rule); pad batch if needed.
    padded_b = _round_up(max(B, 1), 8)
    tb = min(tile_b, padded_b)
    padded_b = _round_up(padded_b, tb)
    if padded_b != B:
        pad = padded_b - B
        state = jnp.pad(state, ((0, pad), (0, 0)))
        action = jnp.pad(action, ((0, pad), (0, 0)))

    # MXU operands in compute_dtype; biases / head row stay f32.
    w1_s_c = w1_s.astype(compute_dtype)
    w1_a_c = w1_a.astype(compute_dtype)
    w2_c = w2.astype(compute_dtype)
    w3_row = w3.reshape(1, fc2).astype(jnp.float32)

    grid = (padded_b // tb,)

    def batch_spec(feat):
        return pl.BlockSpec((tb, feat), lambda i: (i, 0))

    def resident(shape):
        return pl.BlockSpec(shape, lambda i: (0, 0))

    out = pl.pallas_call(
        critic_kernel,
        out_shape=jax.ShapeDtypeStruct((padded_b, 1), jnp.float32),
        grid=grid,
        in_specs=[
            batch_spec(in_dims),        # state tile
            batch_spec(n_act),          # action tile
            resident((in_dims, fc1)),   # w1_s (resident across grid)
            resident((n_act, fc1)),     # w1_a
            resident((1, fc1)),         # b1
            resident((fc1, fc2)),       # w2
            resident((1, fc2)),         # b2
            resident((1, fc2)),         # w3 as a row (head reduce)
            resident((1, 1)),           # b3
        ],
        out_specs=batch_spec(1),
        compiler_params=pltpu.CompilerParams(
            # batch axis is embarrassingly parallel -> shards across the
            # 2 TensorCores on v7x; harmless on v5e/v6e.
            dimension_semantics=("parallel",),
            # keep well under v7x's 32 MiB scoped / 64 MiB physical VMEM.
            vmem_limit_bytes=16 * 1024 * 1024,
        ),
    )(state, action, w1_s_c, w1_a_c, b1, w2_c, b2, w3_row, b3)

    return out[:B] if padded_b != B else out


def init_params(key, input_dims, n_actions, fc1_dims, fc2_dims):
    """Deterministic init mimicking nn.Linear default (uniform +/- 1/sqrt(fan_in))."""
    def linear(k, fan_in, fan_out):
        kw, kb = jax.random.split(k)
        bound = 1.0 / jnp.sqrt(fan_in)
        w = jax.random.uniform(kw, (fan_in, fan_out), jnp.float32, -bound, bound)
        b = jax.random.uniform(kb, (1, fan_out), jnp.float32, -bound, bound)
        return w, b

    k1, k2, k3 = jax.random.split(key, 3)
    w1, b1 = linear(k1, input_dims + n_actions, fc1_dims)
    w2, b2 = linear(k2, fc1_dims, fc2_dims)
    w3, b3 = linear(k3, fc2_dims, 1)
    # Split fc1 weight so the concat folds into the kernel:
    #   cat([s, a]) @ w1 == s @ w1[:input_dims] + a @ w1[input_dims:]
    w1_s, w1_a = w1[:input_dims], w1[input_dims:]
    return (w1_s, w1_a, b1, w2, b2, w3, b3)


def reference_forward(state, action, params):
    """Pure-JAX f32 reference, same math as the PyTorch forward."""
    w1_s, w1_a, b1, w2, b2, w3, b3 = params
    h1 = jnp.maximum(state @ w1_s + action @ w1_a + b1, 0.0)
    h2 = jnp.maximum(h1 @ w2 + b2, 0.0)
    return jnp.sum(h2 * w3.reshape(1, -1), axis=-1, keepdims=True) + b3


# TODO(synk): in a full TD3 training step, fuse the Q1 and Q2 critics (two sets
# of weights, one pallas_call) — at these sizes kernel-launch overhead dominates.

if __name__ == "__main__":
    # Small shapes consistent with the module's forward.
    batch = 2
    input_dims = 16     # state dimension (input_dims[0] in the PyTorch ctor)
    n_actions = 4
    fc1_dims = 32
    fc2_dims = 32

    key = jax.random.PRNGKey(0)
    k_state, k_action, k_params, k_big = jax.random.split(key, 4)

    state = jax.random.normal(k_state, (batch, input_dims), jnp.float32)
    action = jax.random.normal(k_action, (batch, n_actions), jnp.float32)
    params = init_params(k_params, input_dims, n_actions, fc1_dims, fc2_dims)

    ref = reference_forward(state, action, params)

    # 1) f32 path: exact parity with the PyTorch-equivalent math.
    q_f32 = jax.block_until_ready(
        critic_forward(state, action, params, compute_dtype=jnp.float32))
    assert q_f32.shape == (batch, 1)
    assert jnp.allclose(q_f32, ref, atol=1e-5, rtol=1e-5)

    # 2) bf16 MXU path (default): loose tolerance vs f32 reference.
    q_bf16 = jax.block_until_ready(critic_forward(state, action, params))
    assert q_bf16.shape == (batch, 1)
    assert jnp.allclose(q_bf16, ref, atol=5e-2, rtol=5e-2)

    # 3) Realistic RL batch: exercises the batch grid (multiple tiles) with
    #    resident weights and the "parallel" batch axis.
    big_b = 512
    ks, ka = jax.random.split(k_big)
    big_state = jax.random.normal(ks, (big_b, input_dims), jnp.float32)
    big_action = jax.random.normal(ka, (big_b, n_actions), jnp.float32)
    q_big = jax.block_until_ready(
        critic_forward(big_state, big_action, params, tile_b=256))
    big_ref = reference_forward(big_state, big_action, params)
    assert q_big.shape == (big_b, 1)
    assert jnp.allclose(q_big, big_ref, atol=5e-2, rtol=5e-2)

    print("KERNEL_OK")
</pallas_src>

<mosaic_0001>
module attributes {stable_mosaic.version = 11 : i64} {
  func.func @critic_kernel(%arg0: i32, %arg1: memref<8x16xf32, #tpu.memory_space<vmem>>, %arg2: memref<8x4xf32, #tpu.memory_space<vmem>>, %arg3: memref<16x32xf32, #tpu.memory_space<vmem>>, %arg4: memref<4x32xf32, #tpu.memory_space<vmem>>, %arg5: memref<1x32xf32, #tpu.memory_space<vmem>>, %arg6: memref<32x32xf32, #tpu.memory_space<vmem>>, %arg7: memref<1x32xf32, #tpu.memory_space<vmem>>, %arg8: memref<1x32xf32, #tpu.memory_space<vmem>>, %arg9: memref<1x1xf32, #tpu.memory_space<vmem>>, %arg10: memref<8x1xf32, #tpu.memory_space<vmem>>) attributes {dimension_semantics = [#tpu.dimension_semantics<parallel>], iteration_bounds = array<i64: 1>, scalar_prefetch = 0 : i64, scratch_operands = 0 : i64, tpu.core_type = #tpu.core_type<tc>, window_params = [{transform_indices = @transform_0, window_bounds = array<i64: 8, 16>}, {transform_indices = @transform_1, window_bounds = array<i64: 8, 4>}, {pipeline_mode = #tpu.pipeline_mode<synchronous>, transform_indices = @transform_2, window_bounds = array<i64: 16, 32>}, {pipeline_mode = #tpu.pipeline_mode<synchronous>, transform_indices = @transform_3, window_bounds = array<i64: 4, 32>}, {pipeline_mode = #tpu.pipeline_mode<synchronous>, transform_indices = @transform_4, window_bounds = array<i64: 1, 32>}, {pipeline_mode = #tpu.pipeline_mode<synchronous>, transform_indices = @transform_5, window_bounds = array<i64: 32, 32>}, {pipeline_mode = #tpu.pipeline_mode<synchronous>, transform_indices = @transform_6, window_bounds = array<i64: 1, 32>}, {pipeline_mode = #tpu.pipeline_mode<synchronous>, transform_indices = @transform_7, window_bounds = array<i64: 1, 32>}, {pipeline_mode = #tpu.pipeline_mode<synchronous>, transform_indices = @transform_8, window_bounds = array<i64: 1, 1>}, {transform_indices = @transform_9, window_bounds = array<i64: 8, 1>}]} {
    %c0 = arith.constant 0 : index
    %c0_0 = arith.constant 0 : index
    %0 = vector.load %arg1[%c0, %c0_0] : memref<8x16xf32, #tpu.memory_space<vmem>>, vector<8x16xf32>
    %c0_1 = arith.constant 0 : index
    %c0_2 = arith.constant 0 : index
    %1 = vector.load %arg2[%c0_1, %c0_2] : memref<8x4xf32, #tpu.memory_space<vmem>>, vector<8x4xf32>
    %c0_3 = arith.constant 0 : index
    %c0_4 = arith.constant 0 : index
    %2 = vector.load %arg3[%c0_3, %c0_4] : memref<16x32xf32, #tpu.memory_space<vmem>>, vector<16x32xf32>
    %cst = arith.constant dense<0.000000e+00> : vector<8x32xf32>
    %3 = tpu.matmul %0, %2, %cst {dimension_numbers = #tpu.dot_dimension_numbers<[1], [0], [0], [1], [0, 0, 1, 1], [], []>} : vector<8x16xf32>, vector<16x32xf32>, vector<8x32xf32> -> vector<8x32xf32>
    %c0_5 = arith.constant 0 : index
    %c0_6 = arith.constant 0 : index
    %4 = vector.load %arg4[%c0_5, %c0_6] : memref<4x32xf32, #tpu.memory_space<vmem>>, vector<4x32xf32>
    %cst_7 = arith.constant dense<0.000000e+00> : vector<8x32xf32>
    %5 = tpu.matmul %1, %4, %cst_7 {dimension_numbers = #tpu.dot_dimension_numbers<[1], [0], [0], [1], [0, 0, 1, 1], [], []>} : vector<8x4xf32>, vector<4x32xf32>, vector<8x32xf32> -> vector<8x32xf32>
    %6 = arith.addf %3, %5 : vector<8x32xf32>
    %c0_8 = arith.constant 0 : index
    %c0_9 = arith.constant 0 : index
    %7 = vector.load %arg5[%c0_8, %c0_9] : memref<1x32xf32, #tpu.memory_space<vmem>>, vector<1x32xf32>
    %8 = vector.broadcast %7 : vector<1x32xf32> to vector<8x32xf32>
    %9 = arith.addf %6, %8 : vector<8x32xf32>
    %cst_10 = arith.constant 0.000000e+00 : f32
    %10 = vector.broadcast %cst_10 : f32 to vector<8x32xf32>
    %11 = arith.maximumf %9, %10 : vector<8x32xf32>
    %c0_11 = arith.constant 0 : index
    %c0_12 = arith.constant 0 : index
    %12 = vector.load %arg6[%c0_11, %c0_12] : memref<32x32xf32, #tpu.memory_space<vmem>>, vector<32x32xf32>
    %cst_13 = arith.constant dense<0.000000e+00> : vector<8x32xf32>
    %13 = tpu.matmul %11, %12, %cst_13 {dimension_numbers = #tpu.dot_dimension_numbers<[1], [0], [0], [1], [0, 0, 1, 1], [], []>} : vector<8x32xf32>, vector<32x32xf32>, vector<8x32xf32> -> vector<8x32xf32>
    %c0_14 = arith.constant 0 : index
    %c0_15 = arith.constant 0 : index
    %14 = vector.load %arg7[%c0_14, %c0_15] : memref<1x32xf32, #tpu.memory_space<vmem>>, vector<1x32xf32>
    %15 = vector.broadcast %14 : vector<1x32xf32> to vector<8x32xf32>
    %16 = arith.addf %13, %15 : vector<8x32xf32>
    %cst_16 = arith.constant 0.000000e+00 : f32
    %17 = vector.broadcast %cst_16 : f32 to vector<8x32xf32>
    %18 = arith.maximumf %16, %17 : vector<8x32xf32>
    %c0_17 = arith.constant 0 : index
    %c0_18 = arith.constant 0 : index
    %19 = vector.load %arg8[%c0_17, %c0_18] : memref<1x32xf32, #tpu.memory_space<vmem>>, vector<1x32xf32>
    %20 = vector.broadcast %19 : vector<1x32xf32> to vector<8x32xf32>
    %21 = arith.mulf %18, %20 : vector<8x32xf32>
    %cst_19 = arith.constant dense<0.000000e+00> : vector<8xf32>
    %22 = vector.multi_reduction <add>, %21, %cst_19 [1] : vector<8x32xf32> to vector<8xf32>
    %23 = vector.shape_cast %22 : vector<8xf32> to vector<8x1xf32>
    %c0_20 = arith.constant 0 : index
    %c0_21 = arith.constant 0 : index
    %24 = vector.load %arg9[%c0_20, %c0_21] : memref<1x1xf32, #tpu.memory_space<vmem>>, vector<1x1xf32>
    %25 = vector.broadcast %24 : vector<1x1xf32> to vector<8x1xf32>
    %26 = arith.addf %23, %25 : vector<8x1xf32>
    %c0_22 = arith.constant 0 : index
    %c0_23 = arith.constant 0 : index
    %27 = vector.load %arg10[%c0_22, %c0_23] : memref<8x1xf32, #tpu.memory_space<vmem>>, vector<8x1xf32>
    tpu.vector_store %arg10[%c0_22, %c0_23], %26 {strides = array<i32>} : memref<8x1xf32, #tpu.memory_space<vmem>>, vector<8x1xf32>,
    return
  }
  func.func @transform_0(%arg0: i32) -> (i32, i32) {
    %c0_i32 = arith.constant 0 : i32
    %c0_i32_0 = arith.constant 0 : i32
    return %arg0, %c0_i32 : i32, i32
  }
  func.func @transform_1(%arg0: i32) -> (i32, i32) {
    %c0_i32 = arith.constant 0 : i32
    %c0_i32_0 = arith.constant 0 : i32
    return %arg0, %c0_i32 : i32, i32
  }
  func.func @transform_2(%arg0: i32) -> (i32, i32) {
    %c0_i32 = arith.constant 0 : i32
    %c0_i32_0 = arith.constant 0 : i32
    %c0_i32_1 = arith.constant 0 : i32
    return %c0_i32, %c0_i32_0 : i32, i32
  }
  func.func @transform_3(%arg0: i32) -> (i32, i32) {
    %c0_i32 = arith.constant 0 : i32
    %c0_i32_0 = arith.constant 0 : i32
    %c0_i32_1 = arith.constant 0 : i32
    return %c0_i32, %c0_i32_0 : i32, i32
  }
  func.func @transform_4(%arg0: i32) -> (i32, i32) {
    %c0_i32 = arith.constant 0 : i32
    %c0_i32_0 = arith.constant 0 : i32
    %c0_i32_1 = arith.constant 0 : i32
    return %c0_i32, %c0_i32_0 : i32, i32
  }
  func.func @transform_5(%arg0: i32) -> (i32, i32) {
    %c0_i32 = arith.constant 0 : i32
    %c0_i32_0 = arith.constant 0 : i32
    %c0_i32_1 = arith.constant 0 : i32
    return %c0_i32, %c0_i32_0 : i32, i32
  }
  func.func @transform_6(%arg0: i32) -> (i32, i32) {
    %c0_i32 = arith.constant 0 : i32
    %c0_i32_0 = arith.constant 0 : i32
    %c0_i32_1 = arith.constant 0 : i32
    return %c0_i32, %c0_i32_0 : i32, i32
  }
  func.func @transform_7(%arg0: i32) -> (i32, i32) {
    %c0_i32 = arith.constant 0 : i32
    %c0_i32_0 = arith.constant 0 : i32
    %c0_i32_1 = arith.constant 0 : i32
    return %c0_i32, %c0_i32_0 : i32, i32
  }
  func.func @transform_8(%arg0: i32) -> (i32, i32) {
    %c0_i32 = arith.constant 0 : i32
    %c0_i32_0 = arith.constant 0 : i32
    %c0_i32_1 = arith.constant 0 : i32
    return %c0_i32, %c0_i32_0 : i32, i32
  }
  func.func @transform_9(%arg0: i32) -> (i32, i32) {
    %c0_i32 = arith.constant 0 : i32
    %c0_i32_0 = arith.constant 0 : i32
    return %arg0, %c0_i32 : i32, i32
  }
}

</mosaic_0001>

<bundles_post_ra>
// kernel: tpu_custom_call.1
= control target key start
LH: loop header
LB: loop body
LE: loop exit
PB: predicated region body
PF: predicated region fallthrough
CT: control target
= control target key end

     0   :  { %s602_s0 = inlined_call_operand.hbm [shape: f32[8,16], index: 0, kind: input, shape index: {}]   ;;  %s603_s1 = inlined_call_operand.vmem [shape: f32[8,4], index: 1, kind: input, shape index: {}]   ;;  %s604_s2 = inlined_call_operand.hbm [shape: f32[16,32], index: 2, kind: input, shape index: {}]   ;;  %s605_s3 = inlined_call_operand.hbm [shape: f32[4,32], index: 3, kind: input, shape index: {}]   ;;  %s606_s4 = inlined_call_operand.vmem [shape: f32[1,32], index: 4, kind: input, shape index: {}]   ;;  %s607_s5 = inlined_call_operand.vmem [shape: f32[32,32], index: 5, kind: input, shape index: {}]   ;;  %s608_s6 = inlined_call_operand.vmem [shape: f32[1,32], index: 6, kind: input, shape index: {}]   ;;  %s609_s7 = inlined_call_operand.vmem [shape: f32[1,32], index: 7, kind: input, shape index: {}]   ;;  %s610_s8 = inlined_call_operand.<no memory space> [shape: f32[1,1], index: 8, kind: input, shape index: {}]   ;;  %s611_s9 = inlined_call_operand.vmem [shape: f32[8,1], index: 9, kind: output, shape index: {}]  }
   0x1   :  { %v14_v0 = vstv %s610_s8 }
   0x2   :  { %15 = vst [vmem:[#allocation2] sm:$0x1] %v14_v0 }
   0x3   :  { %16 = vsyncpa [#allocation4], 0 }
   0x4   :  { %17 = vsyncpa [#allocation6], 0  ;;  %s478_s11 = smov [#allocation5]   ;;  %s408_s15 = scalar_lea.hbm %s604_s2, 256 }
   0x5   :  { %s35_s12 = sshll.u32 %s478_s11, 4  ;;  %p409_p0 = scmp.ne.s32.totalorder %s604_s2, %s408_s15  ;;  %s36_s12 = int_to_ptr.vmem [resolvable:$true] %s35_s12 }
   0x6   :  { %p412_p1 = scmp.lt.u32.totalorder %s408_s15, %s604_s2 }
   0x8   :  { %p414_p2 = pnand %p412_p1, %p409_p0 }
   0xa   :  { %417 = shalt.err (!%p414_p2)
}
   0xb   :  { %s418_s8 = scalar_lea.vmem %s36_s12, 256  ;;  %p423_p4 = scmp.lt.s32.totalorder %s36_s12, %s36_s12 }
   0xc   :  { %p419_p3 = scmp.ne.s32.totalorder %s36_s12, %s418_s8  ;;  %p424_p5 = scmp.lt.s32.totalorder %s418_s8, %s418_s8 }
   0xe   :  { %p425_p6 = por %p424_p5, %p423_p4 }
  0x10   :  { %p426_p7 = pnand %p425_p6, %p419_p3 }
  0x12   :  { %429 = shalt.err (!%p426_p7)
}
  0x13   :  { %s479_s20 = smov 128   ;;  %s480_s21 = smov 8  }
  0x14   :  { %41 = dma.hbm_to_vmem [thread:$0]  %s604_s2, 256, %s36_s12, [#allocation6], %s479_s20, %s479_s20, %s480_s21  }
  0x15   :  { %s481_s24 = smov [#allocation3]   ;;  %s482_s26 = smov [#allocation7]  }
  0x16   :  { %s24_s25 = sshll.u32 %s481_s24, 4  ;;  %s48_s27 = sshll.u32 %s482_s26, 4  ;;  %s25_s25 = int_to_ptr.vmem [resolvable:$true] %s24_s25  ;;  %s49_s27 = int_to_ptr.vmem [resolvable:$true] %s48_s27 }
  0x17   :  { %s430_s30 = scalar_lea.hbm %s602_s0, 128 }
  0x18   :  { %p431_p8 = scmp.ne.s32.totalorder %s602_s0, %s430_s30  ;;  %p434_p9 = scmp.lt.u32.totalorder %s430_s30, %s602_s0 }
  0x1a   :  { %p436_p10 = pnand %p434_p9, %p431_p8 }
  0x1c   :  { %439 = shalt.err (!%p436_p10)
}
  0x1d   :  { %s440_s2 = scalar_lea.vmem %s25_s25, 128  ;;  %p445_p12 = scmp.lt.s32.totalorder %s25_s25, %s25_s25 }
  0x1e   :  { %p441_p11 = scmp.ne.s32.totalorder %s25_s25, %s440_s2  ;;  %p446_p13 = scmp.lt.s32.totalorder %s440_s2, %s440_s2 }
  0x20   :  { %p447_p0 = por %p446_p13, %p445_p12 }
  0x22   :  { %p448_p1 = pnand %p447_p0, %p441_p11 }
  0x24   :  { %451 = shalt.err (!%p448_p1)
}
  0x25   :  { %27 = dma.hbm_to_vmem [thread:$0]  %s602_s0, 128, %s25_s25, [#allocation4]  }
  0x26   :  { %s452_s18 = scalar_lea.hbm %s605_s3, 64 }
  0x27   :  { %p453_p2 = scmp.ne.s32.totalorder %s605_s3, %s452_s18  ;;  %p456_p3 = scmp.lt.u32.totalorder %s452_s18, %s605_s3 }
  0x29   :  { %p458_p4 = pnand %p456_p3, %p453_p2 }
  0x2b   :  { %461 = shalt.err (!%p458_p4)
}
  0x2c   :  { %s462_s22 = scalar_lea.vmem %s49_s27, 64  ;;  %p467_p6 = scmp.lt.s32.totalorder %s49_s27, %s49_s27 }
  0x2d   :  { %p463_p5 = scmp.ne.s32.totalorder %s49_s27, %s462_s22  ;;  %p468_p7 = scmp.lt.s32.totalorder %s462_s22, %s462_s22 }
  0x2f   :  { %p469_p8 = por %p468_p7, %p467_p6 }
  0x31   :  { %p470_p9 = pnand %p469_p8, %p463_p5 }
  0x33   :  { %473 = shalt.err (!%p470_p9)
}
  0x34   :  { %51 = dma.hbm_to_vmem [thread:$0]  %s605_s3, 64, %s49_s27, [#allocation6]  }
  0x35   :  { %474 = dma.done.wait [#allocation4], 128  }
  0x36   :  { %475 = vsyncadd [#allocation4], 4294967168 }
  0x37   :  { %476 = dma.done.wait [#allocation6], 320  }
  0x38   :  { %477 = vsyncadd [#allocation6], 4294966976  ;;  %v483_v1 = vmov 0.0   ;;  %vm484_vm0 = vmmov 0   ;;  %v485_v2 = vmov 0.0|0.0   ;;  %vm80_vm1 = vcmask 1043456  }
  0x39   :  { %368 = vmatprep.subr.mxu1 %v483_v1  ;;  %370 = vmatprep.mubr.msk.f32.mxu1 %vm484_vm0, %v483_v1  ;;  %vm76_vm2 = vcmask 31744   ;;  %v75_v3 = vld [vmem:[#allocation7] sm:$0xf]  ;;  %v72_v4 = vld [vmem:[%s603_s1] sm:$0xff]  ;;  %v73_v5 = vld [vmem:[#allocation5] sm:$0xff]  ;;  %vm154_vm3 = vcmask 130048  }
  0x3a   :  { %394 = vmatprep.subr.bf16.mxu0 %v485_v2  ;;  %388 = vmatprep.mubr.msk.f32.mxu0 %vm484_vm0, %v483_v1  ;;  %v74_v6 = vld [vmem:[#allocation5 + $0x8] sm:$0xff]  ;;  %v71_v8 = vld [vmem:[#allocation3] sm:$0xff]  ;;  %v353_v18 = vld [vmem:[%s606_s4] ss:$0 sm:$0xff]  ;;  %vm248_vm4 = vcmask 261120   ;;  %vm342_vm5 = vcmask 7168  }
  0x3b   :  { %369 = vmatpush3.msk.msra.mxu1 %vm80_vm1, %v75_v3  ;;  %v392_v7 = vpack.c.bf16 %v74_v6, %v73_v5  ;;  %v237_v9 = vld [vmem:[%s607_s5] sm:$0xff]  ;;  %v238_v10 = vld [vmem:[%s607_s5 + $0x8] sm:$0xff]  ;;  %v239_v12 = vld [vmem:[%s607_s5 + $0x10] sm:$0xff] }
  0x3c   :  { %371 = vmatmul.mubr.msk.f32.vlgmr.msra.gmra.mrb[0].mxu1 %vm76_vm2, %v72_v4  ;;  %391 = vmatprep.subr.bf16.mxu1 %v485_v2  ;;  %v395_v11 = vpack.c.bf16 %v238_v10, %v237_v9  ;;  %v240_v13 = vld [vmem:[%s607_s5 + $0x18] sm:$0xff]  ;;  %v354_v23 = vld [vmem:[%s608_s6] ss:$0 sm:$0xff] }
  0x3d   :  { %377 = vmatprep.mubr.msk.f32.mxu1 %vm484_vm0, %v483_v1  ;;  %393 = vmatpush3.bf16.msra.mxu1 %v392_v7  ;;  %v398_v14 = vpack.c.bf16 %v240_v13, %v239_v12  ;;  %v356_v27 = vld [vmem:[%s609_s7] ss:$0 sm:$0xff] }
  0x3e   :  { %396 = vmatpush3.bf16.msra.mxu0 %v395_v11  ;;  %v357_v31 = vld [vmem:[#allocation2] ss:$0 sm:$0xff] }
  0x3f   :  { %397 = vmatprep.subr.bf16.mxu0 %v485_v2 }
  0x40   :  { %378 = vmatmul.mubr.msk.f32.vlgmr.msra.gmra.mrb[2].mxu1 %vm154_vm3, %v71_v8 }
  0x42   :  { %399 = vmatpush3.bf16.msra.mxu0 %v398_v14 }
 0x10f   :  { %v150_v15 = vpop.f32.mrb[0].mxu1 }
 0x110   :  { %v372_v16 = vpop.f32.mrb[1].mxu1 }
 0x113   :  { %v224_v17 = vpop.f32.mrb[2].mxu1 }
 0x114   :  { %v225_v19 = vadd.f32 %v224_v17, %v150_v15  ;;  %v379_v20 = vpop.f32.mrb[3].mxu1 }
 0x116   :  { %v235_v21 = vadd.f32 %v353_v18, %v225_v19 }
 0x118   :  { %v236_v22 = vmax.f32 %v235_v21, 0.0 }
 0x11a   :  { %389 = vmatmul.mubr.msk.f32.vlgmr.msra.gmra.mrb[0].mxu0 %vm248_vm4, %v236_v22 }
 0x1ed   :  { %v318_v24 = vpop.f32.mrb[0].mxu0 }
 0x1ee   :  { %v319_v25 = vadd.f32 %v354_v23, %v318_v24  ;;  %v390_v26 = vpop.f32.mrb[1].mxu0 }
 0x1f0   :  { %v322_v28 = vmax.f32 %v319_v25, 0.0 }
 0x1f2   :  { %v330_v29 = vmul.f32 %v356_v27, %v322_v28 }
 0x1f4   :  { %v331_v30 = vsel %vm248_vm4, %v330_v29, 0.0 }
 0x1f5   :  { %332 = vadd.xlane.f32.xlu0 %v331_v30 }
 0x282   :  { %v333_v32 = vpop.xlane.xlu0 %332 }
 0x283   :  { %v341_v33 = vadd.f32 %v357_v31, %v333_v32 }
 0x285   :  { %343 = vst.msk [vmem:[%s611_s9] sm:$0xff] %vm342_vm5, %v341_v33 }
 0x286   :  { %348 = vsyncpa [#allocation4], 1 }
 0x287   :  { %349 = vsyncpa [#allocation6], 1 }

</bundles_post_ra>
